<compile_context>
chip_gen: v7x
topology: tpu7x:2x2x1
jax: 0.10.0
libtpu: 0.0.40
codegen_flags: <defaults>
</compile_context>

<pallas_src>
import jax
import jax.numpy as jnp
from jax.experimental import pallas as pl
from jax.experimental.pallas import tpu as pltpu


def _make_kernel(C, HW, T_HW, need_mask):
    inv_hw = 1.0 / float(HW)

    def kernel(x_ref, w1_ref, w2_ref, o_ref, sum_ref, max_ref):
        # x_ref:  (1, C, T_HW)  one batch element, one spatial tile
        # w1_ref: (Cr, C)       f1 1x1-conv weight
        # w2_ref: (C, Cr)       f2 1x1-conv weight
        # o_ref:  (1, C, 1)
        # sum_ref/max_ref: (C, 1) f32 running accumulators
        k = pl.program_id(1)
        nk = pl.num_programs(1)

        x = x_ref[0]                                     # (C, T_HW), native dtype
        ones_col = jnp.ones((T_HW, 1), dtype=x.dtype)    # hoisted MXU sum vector

        @pl.when(k == 0)
        def _():
            sum_ref[...] = jnp.zeros_like(sum_ref)
            max_ref[...] = jnp.full_like(max_ref, -jnp.inf)

        def accumulate(x_sum, x_max):
            # Sum-pool on the idle MXU (f32 accumulation); max on the VPU/XLU.
            psum = jnp.dot(x_sum, ones_col, preferred_element_type=jnp.float32)  # (C, 1)
            pmax = jnp.max(x_max, axis=1, keepdims=True).astype(jnp.float32)     # (C, 1)
            sum_ref[...] += psum
            max_ref[...] = jnp.maximum(max_ref[...], pmax)

        if need_mask:
            is_last = k == nk - 1

            @pl.when(k < nk - 1)
            def _():
                # Interior tiles: unmasked fast path (no iota / compare / select).
                accumulate(x, x)

            @pl.when(is_last)
            def _():
                # Final tile may extend past HW; padded lanes hold undefined data.
                remaining = HW - k * T_HW
                lane = jax.lax.broadcasted_iota(jnp.int32, (1, T_HW), 1)
                valid = lane < remaining                            # (1, T_HW) bcast over C
                x_sum = jnp.where(valid, x, jnp.zeros((), x.dtype))
                x_max = jnp.where(valid, x, jnp.full((), -jnp.inf, x.dtype))
                accumulate(x_sum, x_max)
        else:
            accumulate(x, x)

        @pl.when(k == nk - 1)
        def _():
            avg = sum_ref[...] * inv_hw                      # (C, 1)  true-HW mean
            mx = max_ref[...]                                # (C, 1)
            pooled = jnp.concatenate([avg, mx], axis=1)      # (C, 2)  shared-MLP once
            w1 = w1_ref[...].astype(jnp.float32)             # (Cr, C)
            w2 = w2_ref[...].astype(jnp.float32)             # (C, Cr)
            h = jnp.maximum(
                jnp.dot(w1, pooled, preferred_element_type=jnp.float32), 0.0)  # (Cr, 2)
            o2 = jnp.dot(w2, h, preferred_element_type=jnp.float32)            # (C, 2)
            attn = jax.nn.sigmoid(o2[:, 0:1] + o2[:, 1:2])                      # (C, 1)
            o_ref[0] = attn.astype(o_ref.dtype)

    return kernel


def _vmem_budgets():
    """(per-input-buffer tile budget, vmem_limit_bytes), generation-aware."""
    phys = 128 * 1024 * 1024
    try:
        info = pltpu.get_tpu_info()
        phys = int(getattr(info, "vmem_capacity_bytes", phys)) or phys
    except Exception:
        pass
    if phys <= 96 * 1024 * 1024:
        # v7x-class: 64 MiB VMEM per TensorCore -> cap scoped usage.
        return 8 * 1024 * 1024, 32 * 1024 * 1024
    # v5e / v6e: 128 MiB VMEM -> bigger tiles to amortize ~0.35 us/step overhead.
    return 16 * 1024 * 1024, 64 * 1024 * 1024


def _pick_hw_tile(HW, C, itemsize, requested, budget_bytes):
    """Spatial tile: multiple of 128 (lane constraint), sized so the
    double-buffered x block fits comfortably under the scoped-VMEM limit."""
    if requested is None:
        requested = max(budget_bytes // max(C * itemsize, 1), 128)
    t = max((requested // 128) * 128, 128)
    return HW if t >= HW else t


def channel_attention(x_nchw, w1, w2, *, hw_tile=None):
    """x_nchw: (B, C, H, W); w1: (C//r, C); w2: (C, C//r).  Returns (B, C, 1, 1)."""
    B, C, H, W = x_nchw.shape
    Cr = w1.shape[0]
    HW = H * W
    assert jnp.issubdtype(x_nchw.dtype, jnp.floating), (
        "sum/max ragged-tile padding (0 / -inf) requires a floating dtype")
    itemsize = jnp.dtype(x_nchw.dtype).itemsize

    # Free reshape, no HBM transpose: channels stay contiguous on sublanes.
    x = x_nchw.reshape(B, C, HW)

    tile_budget, vmem_limit = _vmem_budgets()
    t_hw = _pick_hw_tile(HW, C, itemsize, hw_tile, tile_budget)
    k_steps = pl.cdiv(HW, t_hw)
    need_mask = (HW % t_hw) != 0

    # Make sure the limit covers the actual double-buffered x tile + weights.
    tile_bytes = C * t_hw * itemsize
    w_bytes = (w1.size * jnp.dtype(w1.dtype).itemsize
               + w2.size * jnp.dtype(w2.dtype).itemsize)
    vmem_limit = max(vmem_limit, 2 * tile_bytes + 2 * w_bytes + (1 << 20))

    # TODO(synk): v7x B==1 megacore path — split HW across a leading "parallel"
    # grid axis emitting partial (sum, max) stats per core and combine outside.

    kernel = _make_kernel(C, HW, t_hw, need_mask)
    out_dtype = x_nchw.dtype

    cost = pl.CostEstimate(
        flops=2 * B * C * HW + 8 * B * C * Cr,
        transcendentals=B * C,
        bytes_accessed=(x.size * itemsize
                        + w1.size * jnp.dtype(w1.dtype).itemsize
                        + w2.size * jnp.dtype(w2.dtype).itemsize
                        + B * C * jnp.dtype(out_dtype).itemsize),
    )

    out = pl.pallas_call(
        kernel,
        out_shape=jax.ShapeDtypeStruct((B, C, 1), out_dtype),
        grid_spec=pltpu.PrefetchScalarGridSpec(
            num_scalar_prefetch=0,
            grid=(B, k_steps),
            in_specs=[
                pl.BlockSpec((1, C, t_hw), lambda b, k: (b, 0, k)),
                pl.BlockSpec((Cr, C), lambda b, k: (0, 0)),
                pl.BlockSpec((C, Cr), lambda b, k: (0, 0)),
            ],
            out_specs=pl.BlockSpec((1, C, 1), lambda b, k: (b, 0, 0)),
            scratch_shapes=[
                pltpu.VMEM((C, 1), jnp.float32),   # running sum
                pltpu.VMEM((C, 1), jnp.float32),   # running max
            ],
        ),
        compiler_params=pltpu.CompilerParams(
            dimension_semantics=("parallel", "arbitrary"),
            vmem_limit_bytes=int(vmem_limit),
        ),
        cost_estimate=cost,
    )(x, w1, w2)

    return out.reshape(B, C, 1, 1)


def _reference(x_nchw, w1, w2):
    # pure-JAX reference of the PyTorch forward
    avg = jnp.mean(x_nchw, axis=(2, 3))          # (B, C)
    mx = jnp.max(x_nchw, axis=(2, 3))            # (B, C)

    def mlp(v):
        h = jnp.maximum(v @ w1.T, 0.0)           # (B, Cr)
        return h @ w2.T                          # (B, C)

    return jax.nn.sigmoid(mlp(avg) + mlp(mx)).reshape(*x_nchw.shape[:2], 1, 1)


if __name__ == "__main__":
    B, C, H, W = 2, 32, 16, 16          # in_planes=32, ratio=16 -> hidden=2
    ratio = 16
    Cr = C // ratio

    key = jax.random.PRNGKey(0)
    kx, k1, k2 = jax.random.split(key, 3)
    x = jax.random.normal(kx, (B, C, H, W), dtype=jnp.float32)
    # 1x1-conv weights with the trailing (1, 1) spatial dims squeezed:
    w1 = jax.random.normal(k1, (Cr, C), dtype=jnp.float32) * 0.1   # f1: (C//r, C, 1, 1)
    w2 = jax.random.normal(k2, (C, Cr), dtype=jnp.float32) * 0.1   # f2: (C, C//r, 1, 1)

    out = jax.block_until_ready(channel_attention(x, w1, w2))
    ref = _reference(x, w1, w2)
    assert out.shape == (B, C, 1, 1)
    assert jnp.allclose(out, ref, atol=1e-5, rtol=1e-5)

    # Exercise the multi-tile path with a ragged tail (HW=324, tile=128):
    # only the last tile runs the masked branch, interior tiles are unmasked.
    H2 = W2 = 18
    x2 = jax.random.normal(jax.random.PRNGKey(1), (B, C, H2, W2), dtype=jnp.float32)
    out2 = jax.block_until_ready(channel_attention(x2, w1, w2, hw_tile=128))
    ref2 = _reference(x2, w1, w2)
    assert jnp.allclose(out2, ref2, atol=1e-5, rtol=1e-5)

    print("KERNEL_OK")
</pallas_src>

<mosaic_0001>
module attributes {stable_mosaic.version = 11 : i64} {
  func.func @kernel(%arg0: i32, %arg1: i32, %arg2: memref<1x32x256xf32, #tpu.memory_space<vmem>>, %arg3: memref<2x32xf32, #tpu.memory_space<vmem>>, %arg4: memref<32x2xf32, #tpu.memory_space<vmem>>, %arg5: memref<1x32x1xf32, #tpu.memory_space<vmem>>, %arg6: memref<32x1xf32, #tpu.memory_space<vmem>>, %arg7: memref<32x1xf32, #tpu.memory_space<vmem>>) attributes {dimension_semantics = [#tpu.dimension_semantics<parallel>, #tpu.dimension_semantics<arbitrary>], iteration_bounds = array<i64: 2, 1>, scalar_prefetch = 0 : i64, scratch_operands = 2 : i64, tpu.core_type = #tpu.core_type<tc>, window_params = [{transform_indices = @transform_0, window_bounds = array<i64: 1, 32, 256>}, {pipeline_mode = #tpu.pipeline_mode<synchronous>, transform_indices = @transform_1, window_bounds = array<i64: 2, 32>}, {pipeline_mode = #tpu.pipeline_mode<synchronous>, transform_indices = @transform_2, window_bounds = array<i64: 32, 2>}, {transform_indices = @transform_3, window_bounds = array<i64: 1, 32, 1>}]} {
    %c0 = arith.constant 0 : index
    %c0_0 = arith.constant 0 : index
    %c0_1 = arith.constant 0 : index
    %0 = vector.load %arg2[%c0, %c0_0, %c0_1] : memref<1x32x256xf32, #tpu.memory_space<vmem>>, vector<1x32x256xf32>
    %1 = vector.shape_cast %0 : vector<1x32x256xf32> to vector<32x256xf32>
    %cst = arith.constant 1.000000e+00 : f32
    %2 = vector.broadcast %cst : f32 to vector<256x1xf32>
    %c0_i32 = arith.constant 0 : i32
    %3 = arith.cmpi eq, %arg1, %c0_i32 : i32
    %4 = arith.extui %3 : i1 to i32
    %c0_i32_2 = arith.constant 0 : i32
    %5 = arith.cmpi ne, %4, %c0_i32_2 : i32
    scf.if %5 {
      %cst_15 = arith.constant 0.000000e+00 : f32
      %18 = vector.broadcast %cst_15 : f32 to vector<32x1xf32>
      %c0_16 = arith.constant 0 : index
      %c0_17 = arith.constant 0 : index
      %19 = vector.load %arg6[%c0_16, %c0_17] : memref<32x1xf32, #tpu.memory_space<vmem>>, vector<32x1xf32>
      tpu.vector_store %arg6[%c0_16, %c0_17], %18 {strides = array<i32>} : memref<32x1xf32, #tpu.memory_space<vmem>>, vector<32x1xf32>,
      %cst_18 = arith.constant 0xFF800000 : f32
      %20 = vector.broadcast %cst_18 : f32 to vector<32x1xf32>
      %c0_19 = arith.constant 0 : index
      %c0_20 = arith.constant 0 : index
      %21 = vector.load %arg7[%c0_19, %c0_20] : memref<32x1xf32, #tpu.memory_space<vmem>>, vector<32x1xf32>
      tpu.vector_store %arg7[%c0_19, %c0_20], %20 {strides = array<i32>} : memref<32x1xf32, #tpu.memory_space<vmem>>, vector<32x1xf32>,
    } else {
    }
    %cst_3 = arith.constant dense<0.000000e+00> : vector<32x1xf32>
    %6 = tpu.matmul %1, %2, %cst_3 {dimension_numbers = #tpu.dot_dimension_numbers<[1], [0], [0], [1], [0, 0, 1, 1], [], []>} : vector<32x256xf32>, vector<256x1xf32>, vector<32x1xf32> -> vector<32x1xf32>
    %cst_4 = arith.constant dense<0xFF800000> : vector<32xf32>
    %7 = vector.multi_reduction <maximumf>, %1, %cst_4 [1] : vector<32x256xf32> to vector<32xf32>
    %8 = vector.shape_cast %7 : vector<32xf32> to vector<32x1xf32>
    %c0_5 = arith.constant 0 : index
    %c0_6 = arith.constant 0 : index
    %9 = vector.load %arg6[%c0_5, %c0_6] : memref<32x1xf32, #tpu.memory_space<vmem>>, vector<32x1xf32>
    %10 = arith.addf %9, %6 : vector<32x1xf32>
    %c0_7 = arith.constant 0 : index
    %c0_8 = arith.constant 0 : index
    %11 = vector.load %arg6[%c0_7, %c0_8] : memref<32x1xf32, #tpu.memory_space<vmem>>, vector<32x1xf32>
    tpu.vector_store %arg6[%c0_7, %c0_8], %10 {strides = array<i32>} : memref<32x1xf32, #tpu.memory_space<vmem>>, vector<32x1xf32>,
    %c0_9 = arith.constant 0 : index
    %c0_10 = arith.constant 0 : index
    %12 = vector.load %arg7[%c0_9, %c0_10] : memref<32x1xf32, #tpu.memory_space<vmem>>, vector<32x1xf32>
    %13 = arith.maximumf %12, %8 : vector<32x1xf32>
    %c0_11 = arith.constant 0 : index
    %c0_12 = arith.constant 0 : index
    %14 = vector.load %arg7[%c0_11, %c0_12] : memref<32x1xf32, #tpu.memory_space<vmem>>, vector<32x1xf32>
    tpu.vector_store %arg7[%c0_11, %c0_12], %13 {strides = array<i32>} : memref<32x1xf32, #tpu.memory_space<vmem>>, vector<32x1xf32>,
    %c0_i32_13 = arith.constant 0 : i32
    %15 = arith.cmpi eq, %arg1, %c0_i32_13 : i32
    %16 = arith.extui %15 : i1 to i32
    %c0_i32_14 = arith.constant 0 : i32
    %17 = arith.cmpi ne, %16, %c0_i32_14 : i32
    scf.if %17 {
      %c0_15 = arith.constant 0 : index
      %c0_16 = arith.constant 0 : index
      %18 = vector.load %arg6[%c0_15, %c0_16] : memref<32x1xf32, #tpu.memory_space<vmem>>, vector<32x1xf32>
      %cst_17 = arith.constant 3.906250e-03 : f32
      %19 = vector.broadcast %cst_17 : f32 to vector<32x1xf32>
      %20 = arith.mulf %18, %19 : vector<32x1xf32>
      %c0_18 = arith.constant 0 : index
      %c0_19 = arith.constant 0 : index
      %21 = vector.load %arg7[%c0_18, %c0_19] : memref<32x1xf32, #tpu.memory_space<vmem>>, vector<32x1xf32>
      %22 = tpu.concatenate %20, %21 in 1 : vector<32x1xf32>, vector<32x1xf32> -> vector<32x2xf32>
      %c0_20 = arith.constant 0 : index
      %c0_21 = arith.constant 0 : index
      %23 = vector.load %arg3[%c0_20, %c0_21] : memref<2x32xf32, #tpu.memory_space<vmem>>, vector<2x32xf32>
      %c0_22 = arith.constant 0 : index
      %c0_23 = arith.constant 0 : index
      %24 = vector.load %arg4[%c0_22, %c0_23] : memref<32x2xf32, #tpu.memory_space<vmem>>, vector<32x2xf32>
      %cst_24 = arith.constant dense<0.000000e+00> : vector<2x2xf32>
      %25 = tpu.matmul %23, %22, %cst_24 {dimension_numbers = #tpu.dot_dimension_numbers<[1], [0], [0], [1], [0, 0, 1, 1], [], []>} : vector<2x32xf32>, vector<32x2xf32>, vector<2x2xf32> -> vector<2x2xf32>
      %cst_25 = arith.constant 0.000000e+00 : f32
      %26 = vector.broadcast %cst_25 : f32 to vector<2x2xf32>
      %27 = arith.maximumf %25, %26 : vector<2x2xf32>
      %cst_26 = arith.constant dense<0.000000e+00> : vector<32x2xf32>
      %28 = tpu.matmul %24, %27, %cst_26 {dimension_numbers = #tpu.dot_dimension_numbers<[1], [0], [0], [1], [0, 0, 1, 1], [], []>} : vector<32x2xf32>, vector<2x2xf32>, vector<32x2xf32> -> vector<32x2xf32>
      %29 = vector.extract_strided_slice %28 {offsets = [0, 0], sizes = [32, 1], strides = [1, 1]} : vector<32x2xf32> to vector<32x1xf32>
      %30 = vector.extract_strided_slice %28 {offsets = [0, 1], sizes = [32, 1], strides = [1, 1]} : vector<32x2xf32> to vector<32x1xf32>
      %31 = arith.addf %29, %30 : vector<32x1xf32>
      %32 = arith.negf %31 : vector<32x1xf32>
      %33 = math.exp %32 : vector<32x1xf32>
      %cst_27 = arith.constant 1.000000e+00 : f32
      %34 = vector.broadcast %cst_27 : f32 to vector<32x1xf32>
      %35 = arith.addf %34, %33 : vector<32x1xf32>
      %36 = arith.divf %34, %35 : vector<32x1xf32>
      %c0_28 = arith.constant 0 : index
      %c0_29 = arith.constant 0 : index
      %c0_30 = arith.constant 0 : index
      %37 = vector.load %arg5[%c0_28, %c0_29, %c0_30] : memref<1x32x1xf32, #tpu.memory_space<vmem>>, vector<1x32x1xf32>
      %38 = vector.shape_cast %37 : vector<1x32x1xf32> to vector<32x1xf32>
      %39 = vector.shape_cast %36 : vector<32x1xf32> to vector<1x32x1xf32>
      tpu.vector_store %arg5[%c0_28, %c0_29, %c0_30], %39 {strides = array<i32>} : memref<1x32x1xf32, #tpu.memory_space<vmem>>, vector<1x32x1xf32>,
    } else {
    }
    return
  }
  func.func @transform_0(%arg0: i32, %arg1: i32) -> (i32, i32, i32) {
    %c0_i32 = arith.constant 0 : i32
    %c0_i32_0 = arith.constant 0 : i32
    return %arg0, %c0_i32, %arg1 : i32, i32, i32
  }
  func.func @transform_1(%arg0: i32, %arg1: i32) -> (i32, i32) {
    %c0_i32 = arith.constant 0 : i32
    %c0_i32_0 = arith.constant 0 : i32
    %c0_i32_1 = arith.constant 0 : i32
    return %c0_i32, %c0_i32_0 : i32, i32
  }
  func.func @transform_2(%arg0: i32, %arg1: i32) -> (i32, i32) {
    %c0_i32 = arith.constant 0 : i32
    %c0_i32_0 = arith.constant 0 : i32
    %c0_i32_1 = arith.constant 0 : i32
    return %c0_i32, %c0_i32_0 : i32, i32
  }
  func.func @transform_3(%arg0: i32, %arg1: i32) -> (i32, i32, i32) {
    %c0_i32 = arith.constant 0 : i32
    %c0_i32_0 = arith.constant 0 : i32
    %c0_i32_1 = arith.constant 0 : i32
    return %arg0, %c0_i32, %c0_i32_0 : i32, i32, i32
  }
}

</mosaic_0001>

<bundles_post_ra>
// kernel: tpu_custom_call.1
= control target key start
LH: loop header
LB: loop body
LE: loop exit
PB: predicated region body
PF: predicated region fallthrough
CT: control target
= control target key end

     0   :  { %8 = vsyncpa [#allocation5], 0  ;;  %s1496_s0 = inlined_call_operand.hbm [shape: f32[2,32,256], index: 0, kind: input, shape index: {}]   ;;  %s1497_s1 = inlined_call_operand.hbm [shape: f32[2,32], index: 1, kind: input, shape index: {}]   ;;  %s1498_s2 = inlined_call_operand.hbm [shape: f32[32,2], index: 2, kind: input, shape index: {}]   ;;  %s1499_s3 = inlined_call_operand.hbm [shape: f32[2,32,1], index: 3, kind: output, shape index: {}]  }
   0x1   :  { %10 = vsyncpa [#allocation5 + $0x1], 0 }
   0x2   :  { %11 = vsyncpa [#allocation8], 0 }
   0x3   :  { %12 = vsyncpa [#allocation6], 0 }
   0x4   :  { %14 = vsyncpa [#allocation6 + $0x1], 0  ;;  %s1217_s12 = smov 0   ;;  %s1219_s13 = smov 0  }
   0x5   :  { %s1221_s14 = smov 0   ;;  %s1223_s15 = smov 0  }
   0x6   :  { %s1225_s16 = smov 0   ;;  %s1227_s17 = smov 0  }
   0x7 LB: > { %s758_s18 = sadd.s32 4294967295, %s1178_s17   ;;  %s759_s19 = sadd.s32 4294967294, %s1178_s17   ;;  %s1178_s17 = sphi %s1227_s17, %s20_s17   ;;  %s1174_s16 = sphi %s1225_s16, %s1526_s16   ;;  %s1170_s15 = sphi %s1223_s15, %s1525_s15   ;;  %s1166_s14 = sphi %s1221_s14, %s1524_s14   ;;  %s1162_s13 = sphi %s1219_s13, %s1523_s13   ;;  %s1158_s12 = sphi %s1217_s12, %s1522_s12  }
   0x8   : > { %s41_s20 = sadd.s32 1, %s1166_s14  ;;  %p48_p0 = scmp.ne.s32.totalorder %s1166_s14, %s1162_s13 }
   0x9   : > { %p49_p1 = scmp.eq.s32.totalorder %s1178_s17, 0  ;;  %p54_p2 = scmp.ne.s32.totalorder %s1162_s13, %s1158_s12 }
   0xa   : > { %p1255_p3 = scmp.eq.s32.totalorder %s758_s18, 0  ;;  %p120_p4 = scmp.eq.s32.totalorder %s758_s18, 1 }
   0xb   : > { %p1259_p5 = por %p49_p1, %p48_p0  ;;  %p126_p6 = scmp.eq.s32.totalorder %s759_s19, 1 }
   0xc   : > { %s1506_s21 = scalar_select %p1255_p3, 1, 0 }
   0xd   : > { %p1265_p7 = por %p1255_p3, %p54_p2  ;;  %p1269_p8 = por %p120_p4, %p48_p0 }
   0xe   : > { %p1273_p9 = por %p126_p6, %p54_p2  ;;  %p760_p10 = scmp.ge.s32.totalorder %s1178_s17, 1 }
   0xf   : > { %s1508_s23 = scalar_select %p1265_p7, 1, 0 }
  0x10   : > { %s1509_s24 = scalar_select %p1269_p8, 1, 0 }
  0x11   : > { %s1510_s25 = scalar_select %p1273_p9, 1, 0 }
  0x12   : > { %p133_p11 = scmp.lt.s32.totalorder %s1178_s17, 3  ;;  %s1180_s27 = smov [#allocation7]  }
  0x13   : > { %s146_s28 = sshll.u32 %s1180_s27, 4  ;;  %p913_p1 = scmp.lt.s32.totalorder %s1178_s17, 2  ;;  %s147_s28 = int_to_ptr.vmem [resolvable:$true] %s146_s28 }
  0x14   : > { %p1280_p13 = pnand %p760_p10, %p133_p11  ;;  %s1181_s30 = smov [#allocation9]  }
  0x15   : > { %p1289_p4 = pnand %p913_p1, %p1259_p5  ;;  %s156_s4 = sshll.u32 %s1181_s30, 4  ;;  %s1299_s4 = int_to_ptr.vmem [resolvable:$true] %s156_s4 }
  0x16   : > { %s1511_s26 = scalar_select %p1280_p13, 1, 0 }
  0x17   : > { %p896_p0 = pneg %p1280_p13  ;;  %s1006_s8 = scalar_lea.hbm %s1497_s1, 32 }
  0x18   : > { %s1512_s29 = scalar_select %p1289_p4, 1, 0 }
  0x19   : > { %p1295_p2 = pnand %p896_p0, %p1255_p3  ;;  %p1007_p5 = scmp.ne.s32.totalorder %s1497_s1, %s1006_s8 }
  0x1a   : > { %p1013_p1 = scmp.lt.u32.totalorder %s1006_s8, %s1497_s1 }
  0x1b   : > { %p1008_p6 = pneg %p1295_p2 }
  0x1d   : > { %p1009_p10 = pnand %p1008_p6, %p1007_p5 }
  0x1f   : > { %p1010_p11 = pneg %p1009_p10 }
  0x21   : > { %p1015_p0 = pnand %p1013_p1, %p1010_p11 }
  0x23   : > { %1018 = shalt.err (!%p1015_p0)
}
  0x24   : > { %s1019_s19 = scalar_lea.vmem %s147_s28, 32  ;;  %p1027_p3 = scmp.lt.s32.totalorder %s147_s28, %s147_s28 }
  0x25   : > { %p1020_p12 = scmp.ne.s32.totalorder %s147_s28, %s1019_s19  ;;  %p1028_p7 = scmp.lt.s32.totalorder %s1019_s19, %s1019_s19 }
  0x27   : > { %p1022_p9 = pnand %p1020_p12, %p1008_p6  ;;  %p1029_p13 = por %p1028_p7, %p1027_p3 }
  0x29   : > { %p1023_p8 = pneg %p1022_p9 }
  0x2b   : > { %p1030_p4 = pnand %p1029_p13, %p1023_p8 }
  0x2d   : > { %1033 = shalt.err (!%p1030_p4)
}
  0x2e   : > { %899 = dma.hbm_to_vmem [thread:$0]  (!%p1295_p2), %s1497_s1, 32, %s147_s28, [#allocation8]  }
  0x2f   : > { %s1034_s7 = scalar_lea.hbm %s1498_s2, 512 }
  0x30   : > { %p1035_p9 = scmp.ne.s32.totalorder %s1498_s2, %s1034_s7  ;;  %p1041_p8 = scmp.lt.u32.totalorder %s1034_s7, %s1498_s2 }
  0x32   : > { %p1037_p3 = pnand %p1035_p9, %p1008_p6 }
  0x34   : > { %p1038_p7 = pneg %p1037_p3 }
  0x36   : > { %p1043_p12 = pnand %p1041_p8, %p1038_p7 }
  0x38   : > { %1046 = shalt.err (!%p1043_p12)
}
  0x39   : > { %s1047_s28 = scalar_lea.vmem %s1299_s4, 512  ;;  %p1055_p10 = scmp.lt.s32.totalorder %s1299_s4, %s1299_s4 }
  0x3a   : > { %p1048_p13 = scmp.ne.s32.totalorder %s1299_s4, %s1047_s28  ;;  %p1056_p11 = scmp.lt.s32.totalorder %s1047_s28, %s1047_s28 }
  0x3c   : > { %p1050_p4 = pnand %p1048_p13, %p1008_p6  ;;  %p1057_p1 = por %p1056_p11, %p1055_p10 }
  0x3e   : > { %p1051_p5 = pneg %p1050_p4 }
  0x40   : > { %p1058_p0 = pnand %p1057_p1, %p1051_p5 }
  0x42   : > { %1061 = shalt.err (!%p1058_p0)
}
  0x43   : > { %s1182_s18 = smov 128   ;;  %s1183_s19 = smov 8  }
  0x44   : > { %902 = dma.hbm_to_vmem [thread:$0]  (!%p1295_p2), %s1498_s2, 512, %s1299_s4, [#allocation8], %s1182_s18, %s1182_s18, %s1183_s19  }
  0x45   : > { %s170_s30 = sand.u32 1, %s1166_s14   ;;  %s32_s6 = sadd.s32 1, %s1174_s16 }
  0x46   : > { %s764_s7 = sshll.u32 %s170_s30, 6  ;;  %p34_p6 = scmp.ge.s32.totalorder %s32_s6, 2 }
  0x47   : > { %s787_s8 = sshll.u32 %s1174_s16, 10  ;;  %s174_s9 = scalar_lea.vmem [#allocation4], %s764_s7 }
  0x48   : > { %s183_s10 = sshll.u32 %s174_s9, 4  ;;  %s1528_s6 = smov (%p34_p6, %s32_s6), 0  ;;  %s1358_s10 = int_to_ptr.vmem [resolvable:$true] %s183_s10 }
  0x49   : > { %s1356_s5 = scalar_lea.hbm %s1496_s0, %s787_s8  ;;  %s36_s4 = ssub.s32 %s1174_s16, %s1528_s6 }
  0x4a   : > { %p1362_p2 = scmp.eq.s32.totalorder %s36_s4, 0  ;;  %s1366_s19 = scalar_lea.sflag [#allocation5], %s170_s30 }
  0x4b   : > { %s1062_s22 = scalar_lea.hbm %s1356_s5, 1024  ;;  %p1515_p3 = scmp.ne.s32.totalorder %s1512_s29, 0 }
  0x4c   : > { %p1063_p9 = scmp.ne.s32.totalorder %s1356_s5, %s1062_s22  ;;  %s1067_s8 = scalar_lea.hbm %s1496_s0, 2048 }
  0x4d   : > { %p1064_p7 = pneg %p1515_p3  ;;  %p1068_p13 = scmp.lt.u32.totalorder %s1356_s5, %s1496_s0 }
  0x4e   : > { %p1069_p4 = scmp.lt.u32.totalorder %s1067_s8, %s1062_s22  ;;  %p1071_p10 = scmp.lt.u32.totalorder %s1062_s22, %s1356_s5 }
  0x4f   : > { %p1065_p8 = pnand %p1064_p7, %p1063_p9 }
  0x50   : > { %p1070_p5 = por %p1069_p4, %p1068_p13 }
  0x51   : > { %p1066_p12 = pneg %p1065_p8 }
  0x52   : > { %p1072_p11 = por %p1071_p10, %p1070_p5 }
  0x54   : > { %p1073_p1 = pnand %p1072_p11, %p1066_p12 }
  0x56   : > { %1076 = shalt.err (!%p1073_p1)
}
  0x57   : > { %s1077_s30 = scalar_lea.vmem %s1358_s10, 1024  ;;  %s1184_s28 = smov [#allocation4]  }
  0x58   : > { %p1078_p0 = scmp.ne.s32.totalorder %s1358_s10, %s1077_s30  ;;  %s1082_s4 = sshll.u32 %s1184_s28, 4  ;;  %s1083_s4 = int_to_ptr.vmem [resolvable:$false] %s1082_s4 }
  0x59   : > { %s1084_s27 = scalar_lea.vmem %s1083_s4, 2048  ;;  %p1085_p8 = scmp.lt.s32.totalorder %s1358_s10, %s1083_s4 }
  0x5a   : > { %p1080_p6 = pnand %p1078_p0, %p1064_p7  ;;  %p1086_p13 = scmp.lt.s32.totalorder %s1084_s27, %s1077_s30 }
  0x5c   : > { %p1081_p9 = pneg %p1080_p6  ;;  %p1087_p4 = por %p1086_p13, %p1085_p8 }
  0x5e   : > { %p1088_p5 = pnand %p1087_p4, %p1081_p9 }
  0x60   : > { %1091 = shalt.err (!%p1088_p5)
}
  0x61   : > { %s1185_s22 = smov 256   ;;  %s1186_s7 = smov 16  }
  0x62   : > { %906 = dma.hbm_to_vmem [thread:$0]  (!%p1515_p3), %s1356_s5, 1024, %s1358_s10, %s1366_s19, %s1185_s22, %s1185_s22, %s1186_s7  }
  0x63   : > { %s1399_s8 = scalar_select %p1362_p2, %s1166_s14, %s41_s20  }
  0x64   : > { %p1516_p7 = scmp.ne.s32.totalorder %s1511_s26, 0 }
  0x65   : > { %s1404_s9 = sand.u32 (!%p1516_p7), 1, %s1162_s13   ;;  %p1517_p12 = scmp.ne.s32.totalorder (!%p1516_p7), %s1508_s23, 0 }
  0x66   : > { %195 = sbr.rel (%p1516_p7) target bundleno = 997 (0x3e5), region = 32  ;;  %s768_s11 = sshll.u32 (!%p1516_p7), %s1404_s9, 6 }
  0x67   : > { %s198_s30 = scalar_lea.sflag (!%p1516_p7), [#allocation5], %s1404_s9  ;;  %s201_s28 = scalar_lea.vmem (!%p1516_p7), [#allocation4], %s768_s11 }
  0x6d   : > { %1145 = dma.done.wait (%p1517_p12), %s198_s30, 1024  }
  0x6e   : > { %1147 = vsyncadd (%p1517_p12), %s198_s30, 4294966272  ;;  %p1518_p2 = scmp.ne.s32.totalorder %s1506_s21, 0 }
  0x70   : > { %1149 = dma.done.wait (%p1518_p2), [#allocation8], 544  }
  0x71   : > { %1151 = vsyncadd (%p1518_p2), [#allocation8], 4294966752  ;;  %vm245_vm0 = vcmask 7168   ;;  %v1187_v0 = vmov 1.0|1.0   ;;  %v1188_v1 = vmov -inf  }
  0x72   : > { %862 = vmatprep.subr.bf16.mxu0 %v1187_v0  ;;  %252 = vst.msk [vmem:[#allocation3 + $0x10] sm:$0xff] %vm245_vm0, %v1188_v1  ;;  %250 = vst.msk [vmem:[#allocation3] sm:$0xff] %vm245_vm0, %v1188_v1  ;;  %v237_v2 = vld [vmem:[%s201_s28 + $0x20] sm:$0xff]  ;;  %v238_v3 = vld [vmem:[%s201_s28 + $0x28] sm:$0xff]  ;;  %v1189_v14 = vmov 0.0   ;;  %v1190_v27 = vmov 0.0|0.0  }
  0x73   : > { %251 = vst.msk [vmem:[#allocation3 + $0x8] sm:$0xff] %vm245_vm0, %v1188_v1  ;;  %253 = vst.msk [vmem:[#allocation3 + $0x18] sm:$0xff] %vm245_vm0, %v1188_v1  ;;  %863 = vmatpush3.bf16.msra.mxu0 %v1187_v0  ;;  %v233_v4 = vld [vmem:[%s201_s28] sm:$0xff]  ;;  %v345_v5 = vmax.f32 %v237_v2, %v238_v3  ;;  %v234_v6 = vld [vmem:[%s201_s28 + $0x8] sm:$0xff]  ;;  %878 = vmatprep.subr.bf16.mxu1 %v1190_v27  ;;  %vm1191_vm1 = vmmov 0   ;;  %s1192_s20 = smov 1  }
  0x74   : > { %864 = vmatprep.subr.bf16.mxu0 %v1187_v0  ;;  %v239_v7 = vld [vmem:[%s201_s28 + $0x30] sm:$0xff]  ;;  %v240_v8 = vld [vmem:[%s201_s28 + $0x38] sm:$0xff]  ;;  %v339_v9 = vmax.f32 %v233_v4, %v234_v6  ;;  %318 = vmatprep.mubr.f32.mxu0 %v234_v6  ;;  %246 = vst.msk [vmem:[#allocation2] sm:$0xff] %vm245_vm0, %v1189_v14  ;;  %247 = vst.msk [vmem:[#allocation2 + $0x8] sm:$0xff] %vm245_vm0, %v1189_v14  ;;  %vm416_vm2 = vcmask 261120   ;;  %vm491_vm3 = vcmask 15360  }
  0x75   : > { %v235_v10 = vld [vmem:[%s201_s28 + $0x10] sm:$0xff]  ;;  %v236_v11 = vld [vmem:[%s201_s28 + $0x18] sm:$0xff]  ;;  %346 = vmax.xlane.f32.xlu1 %v345_v5  ;;  %v348_v12 = vmax.f32 %v239_v7, %v240_v8  ;;  %248 = vst.msk [vmem:[#allocation2 + $0x10] sm:$0xff] %vm245_vm0, %v1189_v14  ;;  %249 = vst.msk [vmem:[#allocation2 + $0x18] sm:$0xff] %vm245_vm0, %v1189_v14  ;;  %851 = vmatprep.mubr.msk.f32.mxu1 %vm1191_vm1, %v1189_v14  ;;  %vm504_vm4 = vcmask 1041408   ;;  %s1193_s21 = smov 127  }
  0x76   : > { %340 = vmax.xlane.f32.xlu0 %v339_v9  ;;  %v342_v13 = vmax.f32 %v235_v10, %v236_v11  ;;  %s771_s23 = sshll.u32 %s1404_s9, 5  ;;  %s788_s29 = sshll.u32 %s1170_s15, 9 }
  0x77   : > { %865 = vmatpush3.bf16.msra.mxu0 %v1187_v0  ;;  %s231_s26 = scalar_lea.vmem [#allocation10], %s771_s23  ;;  %s1444_s19 = scalar_lea.hbm %s1499_s3, %s788_s29 }
  0x78   : > { %866 = vmatprep.subr.bf16.mxu0 %v1187_v0  ;;  %s655_s10 = sshll.u32 %s231_s26, 4  ;;  %s642_s15 = scalar_lea.sflag [#allocation6], %s1404_s9  ;;  %s1446_s10 = int_to_ptr.vmem [resolvable:$true] %s655_s10 }
  0x79   : > { %349 = vmax.xlane.f32.xlu1 %v348_v12  ;;  %v366_v15 = vld [vmem:[#allocation3 + $0x10] sm:$0xff]  ;;  %v364_v16 = vld [vmem:[#allocation3] sm:$0xff]  ;;  %s1092_s4 = scalar_lea.vmem %s1446_s10, 512  ;;  %p1519_p10 = scmp.ne.s32.totalorder %s1509_s24, 0 }
  0x7a   : > { %343 = vmax.xlane.f32.xlu0 %v342_v13  ;;  %v367_v21 = vld [vmem:[#allocation3 + $0x18] sm:$0xff]  ;;  %v365_v22 = vld [vmem:[#allocation3 + $0x8] sm:$0xff]  ;;  %p1093_p3 = scmp.ne.s32.totalorder %s1446_s10, %s1092_s4  ;;  %s1194_s27 = smov [#allocation10]  }
  0x7b   : > { %867 = vmatpush3.bf16.msra.mxu0 %v1187_v0  ;;  %v351_v36 = vld [vmem:[#allocation2] sm:$0xff]  ;;  %v352_v41 = vld [vmem:[#allocation2 + $0x8] sm:$0xff]  ;;  %s1096_s22 = sshll.u32 %s1194_s27, 4  ;;  %s1097_s22 = int_to_ptr.vmem [resolvable:$false] %s1096_s22 }
  0x7c   : > { %868 = vmatprep.subr.bf16.mxu0 %v1187_v0  ;;  %v353_v46 = vld [vmem:[#allocation2 + $0x10] sm:$0xff]  ;;  %v354_v51 = vld [vmem:[#allocation2 + $0x18] sm:$0xff]  ;;  %p1094_p11 = pnand %p1093_p3, %p1519_p10  ;;  %s1098_s7 = scalar_lea.vmem %s1097_s22, 1024 }
  0x7d   : > { %p1099_p0 = scmp.lt.s32.totalorder %s1446_s10, %s1097_s22  ;;  %p1100_p6 = scmp.lt.s32.totalorder %s1098_s7, %s1092_s4 }
  0x7e   : > { %p1095_p1 = pneg %p1094_p11 }
  0x7f   : > { %869 = vmatpush3.bf16.msra.mxu0 %v1187_v0  ;;  %p1101_p9 = por %p1100_p6, %p1099_p0 }
  0x80   : > { %870 = vmatprep.subr.bf16.mxu0 %v1187_v0 }
  0x81   : > { %p1102_p8 = pnand %p1101_p9, %p1095_p1 }
  0x83   : > { %871 = vmatpush3.bf16.msra.mxu0 %v1187_v0 }
  0x84   : > { %872 = vmatprep.subr.bf16.mxu0 %v1187_v0 }
  0x87   : > { %873 = vmatpush3.bf16.msra.mxu0 %v1187_v0 }
  0x88   : > { %874 = vmatprep.subr.bf16.mxu0 %v1187_v0 }
  0x8b   : > { %875 = vmatpush3.bf16.msra.mxu0 %v1187_v0 }
  0x8c   : > { %876 = vmatprep.subr.bf16.mxu0 %v1187_v0 }
  0x8f   : > { %877 = vmatpush3.bf16.msra.mxu0 %v1187_v0 }
  0x92   : > { %319 = vmatmul.mubr.f32.vlgmr.msra.gmra.mrb[0].mxu0 %v233_v4 }
  0x93   : > { %323 = vmatprep.mubr.f32.mxu0 %v236_v11  ;;  %v412_v11 = vld [vmem:[#allocation9] sm:$0xff] }
  0x96   : > { %324 = vmatmul.mubr.f32.gmra.mrb[2].mxu0 %v235_v10  ;;  %v411_v10 = vld [vmem:[#allocation7] sm:$0x3] }
  0x97   : > { %328 = vmatprep.mubr.f32.mxu0 %v238_v3 }
  0x9a   : > { %329 = vmatmul.mubr.f32.gmra.mrb[4].mxu0 %v237_v2 }
  0x9b   : > { %333 = vmatprep.mubr.f32.mxu0 %v240_v8 }
  0x9e   : > { %334 = vmatmul.mubr.f32.gmra.mrb[6].mxu0 %v239_v7 }
 0x102   : > { %v347_v17 = vpop.xlane.xlu1 %346 }
 0x103   : > { %v370_v18 = vmax.f32 %v366_v15, %v347_v17  ;;  %v341_v19 = vpop.xlane.xlu0 %340  ;;  %v413_v15 = vld [vmem:[#allocation9 + $0x8] sm:$0xff]  ;;  %v415_v17 = vld [vmem:[#allocation9 + $0x18] sm:$0xff] }
 0x104   : > { %v368_v20 = vmax.f32 %v364_v16, %v341_v19  ;;  %v414_v16 = vld [vmem:[#allocation9 + $0x10] sm:$0xff] }
 0x105   : > { %374 = vst.msk [vmem:[#allocation3 + $0x10] sm:$0xff] %vm245_vm0, %v370_v18 }
 0x106   : > { %372 = vst.msk [vmem:[#allocation3] sm:$0xff] %vm245_vm0, %v368_v20  ;;  %v350_v23 = vpop.xlane.xlu1 %349 }
 0x107   : > { %v371_v24 = vmax.f32 %v367_v21, %v350_v23  ;;  %v344_v25 = vpop.xlane.xlu0 %343 }
 0x108   : > { %v369_v26 = vmax.f32 %v365_v22, %v344_v25 }
 0x109   : > { %375 = vst.msk [vmem:[#allocation3 + $0x18] sm:$0xff] %vm245_vm0, %v371_v24 }
 0x10a   : > { %373 = vst.msk [vmem:[#allocation3 + $0x8] sm:$0xff] %vm245_vm0, %v369_v26 }
 0x10c   : > { %v389_v28 = vld [vmem:[#allocation3 + $0x10] sm:$0xff] }
 0x10d   : > { %v387_v31 = vld [vmem:[#allocation3] sm:$0xff] }
 0x110   : > { %v390_v29 = vld [vmem:[#allocation3 + $0x18] sm:$0xff] }
 0x111   : > { %v985_v30 = vpack.i.bf16 %v390_v29, %v389_v28  ;;  %v388_v32 = vld [vmem:[#allocation3 + $0x8] sm:$0xff] }
 0x112   : > { %v980_v33 = vpack.i.bf16 %v388_v32, %v387_v31 }
 0x113   : > { %986 = vrot.lane.b32.xlu1 %v985_v30, %s1192_s20 }
 0x114   : > { %981 = vrot.lane.b32.xlu0 %v980_v33, %s1192_s20 }
 0x165   : > { %v821_v34 = vpop.f32.mrb[0].mxu0 }
 0x166   : > { %v822_v35 = vpop.f32.mrb[1].mxu0 }
 0x167   : > { %v823_v37 = vadd.f32 %v822_v35, %v821_v34 }
 0x169   : > { %v355_v38 = vadd.f32 %v823_v37, %v351_v36  ;;  %v824_v39 = vpop.f32.mrb[2].mxu0 }
 0x16a   : > { %v825_v40 = vpop.f32.mrb[3].mxu0 }
 0x16b   : > { %360 = vst.msk [vmem:[#allocation2] sm:$0xff] %vm245_vm0, %v355_v38  ;;  %v826_v42 = vadd.f32 %v825_v40, %v824_v39 }
 0x16d   : > { %v356_v43 = vadd.f32 %v826_v42, %v352_v41  ;;  %v827_v44 = vpop.f32.mrb[4].mxu0 }
 0x16e   : > { %v828_v45 = vpop.f32.mrb[5].mxu0 }
 0x16f   : > { %361 = vst.msk [vmem:[#allocation2 + $0x8] sm:$0xff] %vm245_vm0, %v356_v43  ;;  %v829_v47 = vadd.f32 %v828_v45, %v827_v44 }
 0x171   : > { %v357_v48 = vadd.f32 %v829_v47, %v353_v46  ;;  %v830_v49 = vpop.f32.mrb[6].mxu0 }
 0x172   : > { %v831_v50 = vpop.f32.mrb[7].mxu0  ;;  %v379_v54 = vld [vmem:[#allocation2] sm:$0xff] }
 0x173   : > { %362 = vst.msk [vmem:[#allocation2 + $0x10] sm:$0xff] %vm245_vm0, %v357_v48  ;;  %v832_v52 = vadd.f32 %v831_v50, %v830_v49  ;;  %v383_v60 = vmul.f32 0.00390625, %v379_v54 }
 0x175   : > { %v358_v53 = vadd.f32 %v832_v52, %v354_v51 }
 0x176   : > { %v380_v55 = vld [vmem:[#allocation2 + $0x8] sm:$0xff] }
 0x177   : > { %363 = vst.msk [vmem:[#allocation2 + $0x18] sm:$0xff] %vm245_vm0, %v358_v53  ;;  %v384_v61 = vmul.f32 0.00390625, %v380_v55 }
 0x17a   : > { %v381_v56 = vld [vmem:[#allocation2 + $0x10] sm:$0xff] }
 0x17b   : > { %v385_v62 = vmul.f32 0.00390625, %v381_v56 }
 0x17e   : > { %v382_v57 = vld [vmem:[#allocation2 + $0x18] sm:$0xff] }
 0x17f   : > { %v386_v63 = vmul.f32 0.00390625, %v382_v57 }
 0x185   : > { %v987_v58 = vpop.permute.xlu1 %986 }
 0x186   : > { %v982_v59 = vpop.permute.xlu0 %981  ;;  %v989_v0 = vunpack.i.h.bf16 %v987_v58  ;;  %v988_v1 = vunpack.i.l.bf16 %v987_v58 }
 0x187   : > { %v984_v2 = vunpack.i.h.bf16 %v982_v59  ;;  %v983_v3 = vunpack.i.l.bf16 %v982_v59 }
 0x188   : > { %v409_v7 = vsel %vm245_vm0, %v385_v62, %v988_v1  ;;  %v410_v8 = vsel %vm245_vm0, %v386_v63, %v989_v0 }
 0x189   : > { %v407_v4 = vsel %vm245_vm0, %v383_v60, %v983_v3  ;;  %v408_v5 = vsel %vm245_vm0, %v384_v61, %v984_v2  ;;  %v882_v9 = vpack.c.bf16 %v410_v8, %v409_v7 }
 0x18a   : > { %v879_v6 = vpack.c.bf16 %v408_v5, %v407_v4 }
 0x18c   : > { %880 = vmatpush3.bf16.msra.mxu1 %v879_v6 }
 0x18d   : > { %881 = vmatprep.subr.bf16.mxu1 %v1190_v27 }
 0x190   : > { %883 = vmatpush3.bf16.msra.mxu1 %v882_v9 }
 0x193   : > { %852 = vmatmul.mubr.msk.f32.vlgmr.msra.gmra.mrb[0].mxu1 %vm416_vm2, %v411_v10 }
 0x194   : > { %856 = vmatprep.mubr.msk.f32.mxu1 %vm491_vm3, %v412_v11 }
 0x266   : > { %v486_v12 = vpop.f32.mrb[0].mxu1 }
 0x267   : > { %v490_v13 = vmax.f32 %v486_v12, 0.0  ;;  %v853_v14 = vpop.f32.mrb[1].mxu1 }
 0x269   : > { %854 = vmatprep.subr.msk.mxu1 %vm504_vm4, %v490_v13 }
 0x26a   : > { %855 = vmatpush3.msk.msra.mxu1 %vm504_vm4, %v490_v13 }
 0x26b   : > { %857 = vmatmul.mubr.msk.f32.vlgmr.msra.gmra.mrb[2].mxu1 %vm491_vm3, %v413_v15 }
 0x26c   : > { %859 = vmatprep.mubr.msk.f32.mxu1 %vm491_vm3, %v414_v16 }
 0x26f   : > { %860 = vmatmul.mubr.msk.f32.gmra.mrb[4].mxu1 %vm491_vm3, %v415_v17 }
 0x33e   : > { %v858_v18 = vpop.f32.mrb[2].mxu1 }
 0x33f   : > { %599 = vrot.lane.b32.xlu1 %v858_v18, %s1193_s21  ;;  %v574_v19 = vpop.f32.mrb[3].mxu1 }
 0x342   : > { %v861_v20 = vpop.f32.mrb[4].mxu1 }
 0x343   : > { %597 = vrot.lane.b32.xlu1 %v574_v19, %s1193_s21  ;;  %v584_v21 = vpop.f32.mrb[5].mxu1 }
 0x344   : > { %601 = vrot.lane.b32.xlu0 %v584_v21, %s1193_s21 }
 0x347   : > { %603 = vrot.lane.b32.xlu1 %v861_v20, %s1193_s21 }
 0x3b1   : > { %v600_v22 = vpop.permute.xlu1 %599 }
 0x3b2   : > { %v610_v23 = vadd.f32 %v858_v18, %v600_v22 }
 0x3b4   : > { %v779_v24 = vmul.f32 -1.442695, %v610_v23 }
 0x3b5   : > { %v598_v25 = vpop.permute.xlu1 %597 }
 0x3b6   : > { %990 = vpow2.f32 %v779_v24  ;;  %v609_v26 = vadd.f32 %v598_v25, %v574_v19  ;;  %v602_v27 = vpop.permute.xlu0 %601 }
 0x3b7   : > { %v611_v28 = vadd.f32 %v602_v27, %v584_v21 }
 0x3b8   : > { %v778_v29 = vmul.f32 -1.442695, %v609_v26 }
 0x3b9   : > { %v780_v30 = vmul.f32 -1.442695, %v611_v28  ;;  %v604_v31 = vpop.permute.xlu1 %603 }
 0x3ba   : > { %992 = vpow2.f32 %v778_v29  ;;  %v612_v32 = vadd.f32 %v861_v20, %v604_v31 }
 0x3bb   : > { %994 = vpow2.f32 %v780_v30 }
 0x3bc   : > { %v781_v33 = vmul.f32 -1.442695, %v612_v32 }
 0x3be   : > { %996 = vpow2.f32 %v781_v33 }
 0x3c0   : > { %v991_v34 = vpop.eup %990 }
 0x3c1   : > { %v626_v35 = vadd.f32 1.0, %v991_v34 }
 0x3c3   : > { %998 = vrcp.f32 %v626_v35 }
 0x3c4   : > { %v993_v36 = vpop.eup %992 }
 0x3c5   : > { %v995_v37 = vpop.eup %994  ;;  %v625_v38 = vadd.f32 1.0, %v993_v36 }
 0x3c6   : > { %v627_v39 = vadd.f32 1.0, %v995_v37 }
 0x3c7   : > { %1000 = vrcp.f32 %v625_v38 }
 0x3c8   : > { %v997_v40 = vpop.eup %996  ;;  %1002 = vrcp.f32 %v627_v39 }
 0x3c9   : > { %v628_v41 = vadd.f32 1.0, %v997_v40 }
 0x3cb   : > { %1004 = vrcp.f32 %v628_v41 }
 0x3cd   : > { %v999_v42 = vpop.eup %998 }
 0x3ce   : > { %638 = vst.msk [vmem:[%s231_s26 + $0x8] sm:$0xff] %vm245_vm0, %v999_v42 }
 0x3d1   : > { %v1001_v43 = vpop.eup %1000 }
 0x3d2   : > { %v1003_v44 = vpop.eup %1002  ;;  %637 = vst.msk [vmem:[%s231_s26] sm:$0xff] %vm245_vm0, %v1001_v43 }
 0x3d3   : > { %639 = vst.msk [vmem:[%s231_s26 + $0x10] sm:$0xff] %vm245_vm0, %v1003_v44 }
 0x3d5   : > { %v1005_v45 = vpop.eup %1004 }
 0x3d6   : > { %640 = vst.msk [vmem:[%s231_s26 + $0x18] sm:$0xff] %vm245_vm0, %v1005_v45 }
 0x3d7   : > { %1105 = shalt.err (!%p1102_p8)
}
 0x3d8   : > { %s1106_s11 = scalar_lea.hbm %s1444_s19, 512  ;;  %s1110_s20 = scalar_lea.hbm %s1499_s3, 1024 }
 0x3d9   : > { %p1107_p13 = scmp.ne.s32.totalorder %s1444_s19, %s1106_s11  ;;  %p1111_p7 = scmp.lt.u32.totalorder %s1444_s19, %s1499_s3 }
 0x3da   : > { %p1112_p12 = scmp.lt.u32.totalorder %s1110_s20, %s1106_s11  ;;  %p1114_p3 = scmp.lt.u32.totalorder %s1106_s11, %s1444_s19 }
 0x3db   : > { %p1108_p4 = pnand %p1107_p13, %p1519_p10 }
 0x3dc   : > { %p1113_p2 = por %p1112_p12, %p1111_p7 }
 0x3dd   : > { %p1109_p5 = pneg %p1108_p4 }
 0x3de   : > { %p1115_p11 = por %p1114_p3, %p1113_p2 }
 0x3e0   : > { %p1116_p1 = pnand %p1115_p11, %p1109_p5 }
 0x3e2   : > { %1119 = shalt.err (!%p1116_p1)
}
 0x3e3   : > { %s1195_s26 = smov 128   ;;  %s1196_s29 = smov 8  }
 0x3e4   : > { %894 = dma.vmem_to_hbm [thread:$0]  (%p1519_p10), %s1446_s10, 512, %s1444_s19, %s642_s15, %s1195_s26, %s1195_s26, %s1196_s29  }
 0x3e5 PF: > { %s670_s5 = sand.u32 1, %s1158_s12   ;;  %p1520_p0 = scmp.ne.s32.totalorder %s1510_s25, 0 }
 0x3e6   : > { %p1521_p6 = scmp.ge.s32.totalorder %s1178_s17, 2  ;;  %s671_s18 = scalar_lea.sflag [#allocation6], %s670_s5 }
 0x3e8   : > { %p908_p9 = pnand %p1521_p6, %p1520_p0 }
 0x3ea   : > { %1153 = dma.done.wait (!%p908_p9), %s671_s18, 512  }
 0x3eb   : > { %1155 = vsyncadd (!%p908_p9), %s671_s18, 4294966784  ;;  %s20_s17 = sadd.s32 1, %s1178_s17   ;;  %s1522_s12 = smov %s1162_s13 }
 0x3ec   : > { %p17_p8 = scmp.ge.s32.totalorder %s20_s17, 4   ;;  %s1523_s13 = smov %s1166_s14 }
 0x3ed   : > { %s1524_s14 = smov %s1399_s8  ;;  %s1525_s15 = smov %s1174_s16 }
 0x3ee   : > { %s1526_s16 = smov %s1528_s6  ;;  %19 = sbr.rel (!%p17_p8) target bundleno = 7 (0x7), region = 93 }
 0x3f5   :  { %676 = vsyncpa [#allocation5], 1 }
 0x3f6   :  { %678 = vsyncpa [#allocation5 + $0x1], 1 }
 0x3f7   :  { %679 = vsyncpa [#allocation8], 1 }
 0x3f8   :  { %680 = vsyncpa [#allocation6], 1 }
 0x3f9   :  { %682 = vsyncpa [#allocation6 + $0x1], 1 }

</bundles_post_ra>
